<compile_context>
chip_gen: v6e
topology: v6e:2x2x1
jax: 0.10.0
libtpu: 0.0.40
codegen_flags: <defaults>
</compile_context>

<pallas_src>
import functools

import jax
import jax.numpy as jnp
from jax.experimental import pallas as pl
from jax.experimental.pallas import tpu as pltpu


def _kl_kernel(fs_ref, ft_ref, out_ref, *, inv_temp):
    """Per-row KL(q || p) over the lane (softmax) axis.

    fs_ref, ft_ref: (TR, S) tiles of the flattened (N*C, H*W) features.
    out_ref:        (TR, 1) per-row KL divergence (f32).
    """
    xs = fs_ref[...].astype(jnp.float32) * inv_temp
    xt = ft_ref[...].astype(jnp.float32) * inv_temp

    # Stable softmax pieces for student (p) and teacher (q).
    zs = xs - jnp.max(xs, axis=-1, keepdims=True)
    zt = xt - jnp.max(xt, axis=-1, keepdims=True)

    ss = jnp.sum(jnp.exp(zs), axis=-1, keepdims=True)   # student partition fn
    et = jnp.exp(zt)
    st = jnp.sum(et, axis=-1, keepdims=True)             # teacher partition fn

    # log p = zs - log ss ; log q = zt - log st ; q = et / st, and sum(q) == 1:
    #   sum_s q*(log q - log p) = (1/st)*sum_s et*(zt - zs) + (log ss - log st)
    # (per-row constant hoisted out of the lane reduction; the former
    #  R*S-wide divide / broadcast-add / q*delta temporaries are gone).
    num = jnp.sum(et * (zt - zs), axis=-1, keepdims=True)
    out_ref[...] = num / st + (jnp.log(ss) - jnp.log(st))


def _generation_budgets():
    """(vmem_limit_bytes, per-input per-step tile byte budget) per TPU gen."""
    cap = 64 * 1024 * 1024
    try:
        info = pltpu.get_tpu_info()
        cap = int(getattr(info, "vmem_capacity_bytes", cap))
    except Exception:
        pass
    if cap >= 100 * 1024 * 1024:
        # v5e / v6e class: 128 MiB physical VMEM.
        return 96 * 1024 * 1024, 4 * 1024 * 1024
    # v7x class (64 MiB per TensorCore) or unknown: stay conservative.
    return 48 * 1024 * 1024, 2 * 1024 * 1024


def _row_tiling(R, S, itemsize, tile_bytes):
    """Pick (row_tile, grid) for the flattened (R, S) features."""
    # Sublane packing multiple for the input dtype (8 f32 / 16 bf16 / 32 i8).
    mult = {1: 32, 2: 16}.get(itemsize, 8)
    if R <= mult:
        return R, 1                                   # single full-extent block
    bytes_per_row = S * itemsize
    rows_budget = max(mult, (tile_bytes // bytes_per_row) // mult * mult)
    # At least two row tiles whenever possible so v7x's second TensorCore
    # gets work (costs one extra ~0.35us grid step on 1-TC chips: negligible).
    min_tiles = 2 if R >= 2 * mult else 1
    n_tiles = max(pl.cdiv(R, rows_budget), min_tiles)
    tr = pl.cdiv(pl.cdiv(R, n_tiles), mult) * mult
    if tr >= R:
        return R, 1
    return tr, pl.cdiv(R, tr)


def feature_kl_loss(f_s, f_t, *, temperature=4.0, tile_bytes=None,
                    vmem_limit_bytes=None):
    """Pallas equivalent of FeatureKLLoss.forward. Returns shape (N,) f32."""
    assert f_s.shape == f_t.shape, "student/teacher features must match shape"
    N, C, H, W = f_s.shape
    R, S = N * C, H * W

    # Keep the producer dtype (bf16 halves HBM bytes); cast to f32 per-tile
    # inside the kernel.
    fs = f_s.reshape(R, S)
    ft = f_t.reshape(R, S)
    itemsize = jnp.dtype(f_s.dtype).itemsize

    auto_vmem, auto_tile = _generation_budgets()
    if vmem_limit_bytes is None:
        vmem_limit_bytes = auto_vmem
    if tile_bytes is None:
        tile_bytes = auto_tile

    tr, grid = _row_tiling(R, S, itemsize, tile_bytes)

    kernel = functools.partial(_kl_kernel, inv_temp=1.0 / float(temperature))

    kl_rows = pl.pallas_call(
        kernel,
        out_shape=jax.ShapeDtypeStruct((R, 1), jnp.float32),
        grid_spec=pltpu.PrefetchScalarGridSpec(
            num_scalar_prefetch=0,
            grid=(grid,),
            in_specs=[
                pl.BlockSpec((tr, S), lambda i: (i, 0)),
                pl.BlockSpec((tr, S), lambda i: (i, 0)),
            ],
            out_specs=pl.BlockSpec((tr, 1), lambda i: (i, 0)),
        ),
        compiler_params=pltpu.CompilerParams(
            dimension_semantics=("parallel",),     # independent row tiles
            vmem_limit_bytes=vmem_limit_bytes,     # generation-specific cap
        ),
    )(fs, ft)

    # Tiny (R,) -> mean over C and the T**2 scale are plain-JAX glue.
    kl_nc = kl_rows[:, 0].reshape(N, C)
    return kl_nc.mean(axis=1) * (float(temperature) ** 2)


def _reference(f_s, f_t, temperature=4.0):
    N, C, H, W = f_s.shape
    s = (f_s.astype(jnp.float32) / temperature).reshape(N, C, H * W)
    t = (f_t.astype(jnp.float32) / temperature).reshape(N, C, H * W)
    log_p = jax.nn.log_softmax(s, axis=-1)
    q = jax.nn.softmax(t, axis=-1)
    log_q = jax.nn.log_softmax(t, axis=-1)
    kl = jnp.sum(q * (log_q - log_p), axis=-1)     # (N, C)
    return kl.mean(axis=-1) * (temperature ** 2)   # (N,)


if __name__ == "__main__":
    key = jax.random.PRNGKey(0)
    k1, k2, k3, k4 = jax.random.split(key, 4)

    # Case 1: small f32 conv-feature maps (NCHW), single full-extent block.
    B, C, H, W = 2, 4, 16, 16
    f_s = jax.random.normal(k1, (B, C, H, W), dtype=jnp.float32)
    f_t = jax.random.normal(k2, (B, C, H, W), dtype=jnp.float32)
    loss = jax.block_until_ready(feature_kl_loss(f_s, f_t))
    ref = _reference(f_s, f_t)
    assert loss.shape == (B,)
    assert jnp.allclose(loss, ref, rtol=1e-4, atol=1e-6), (loss, ref)

    # Case 2: bf16 inputs, multi-tile grid with a ragged last row tile
    # (R = 72 rows, bf16 sublane multiple 16 -> tiles of 48).
    B2, C2, H2, W2 = 3, 24, 8, 8
    g_s = jax.random.normal(k3, (B2, C2, H2, W2), dtype=jnp.bfloat16)
    g_t = jax.random.normal(k4, (B2, C2, H2, W2), dtype=jnp.bfloat16)
    loss2 = jax.block_until_ready(feature_kl_loss(g_s, g_t))
    ref2 = _reference(g_s, g_t)
    assert loss2.shape == (B2,)
    assert jnp.allclose(loss2, ref2, rtol=1e-3, atol=1e-5), (loss2, ref2)

    print("KERNEL_OK")
</pallas_src>

<mosaic_0001>
module attributes {stable_mosaic.version = 11 : i64} {
  func.func @_kl_kernel(%arg0: i32, %arg1: memref<8x256xf32, #tpu.memory_space<vmem>>, %arg2: memref<8x256xf32, #tpu.memory_space<vmem>>, %arg3: memref<8x1xf32, #tpu.memory_space<vmem>>) attributes {dimension_semantics = [#tpu.dimension_semantics<parallel>], iteration_bounds = array<i64: 1>, scalar_prefetch = 0 : i64, scratch_operands = 0 : i64, tpu.core_type = #tpu.core_type<tc>, window_params = [{transform_indices = @transform_0, window_bounds = array<i64: 8, 256>}, {transform_indices = @transform_1, window_bounds = array<i64: 8, 256>}, {transform_indices = @transform_2, window_bounds = array<i64: 8, 1>}]} {
    %c0 = arith.constant 0 : index
    %c0_0 = arith.constant 0 : index
    %0 = vector.load %arg1[%c0, %c0_0] : memref<8x256xf32, #tpu.memory_space<vmem>>, vector<8x256xf32>
    %cst = arith.constant 2.500000e-01 : f32
    %1 = vector.broadcast %cst : f32 to vector<8x256xf32>
    %2 = arith.mulf %0, %1 : vector<8x256xf32>
    %c0_1 = arith.constant 0 : index
    %c0_2 = arith.constant 0 : index
    %3 = vector.load %arg2[%c0_1, %c0_2] : memref<8x256xf32, #tpu.memory_space<vmem>>, vector<8x256xf32>
    %cst_3 = arith.constant 2.500000e-01 : f32
    %4 = vector.broadcast %cst_3 : f32 to vector<8x256xf32>
    %5 = arith.mulf %3, %4 : vector<8x256xf32>
    %cst_4 = arith.constant dense<0xFF800000> : vector<8xf32>
    %6 = vector.multi_reduction <maximumf>, %2, %cst_4 [1] : vector<8x256xf32> to vector<8xf32>
    %7 = vector.shape_cast %6 : vector<8xf32> to vector<8x1xf32>
    %8 = vector.broadcast %7 : vector<8x1xf32> to vector<8x256xf32>
    %9 = arith.subf %2, %8 : vector<8x256xf32>
    %cst_5 = arith.constant dense<0xFF800000> : vector<8xf32>
    %10 = vector.multi_reduction <maximumf>, %5, %cst_5 [1] : vector<8x256xf32> to vector<8xf32>
    %11 = vector.shape_cast %10 : vector<8xf32> to vector<8x1xf32>
    %12 = vector.broadcast %11 : vector<8x1xf32> to vector<8x256xf32>
    %13 = arith.subf %5, %12 : vector<8x256xf32>
    %14 = math.exp %9 : vector<8x256xf32>
    %cst_6 = arith.constant dense<0.000000e+00> : vector<8xf32>
    %15 = vector.multi_reduction <add>, %14, %cst_6 [1] : vector<8x256xf32> to vector<8xf32>
    %16 = vector.shape_cast %15 : vector<8xf32> to vector<8x1xf32>
    %17 = math.exp %13 : vector<8x256xf32>
    %cst_7 = arith.constant dense<0.000000e+00> : vector<8xf32>
    %18 = vector.multi_reduction <add>, %17, %cst_7 [1] : vector<8x256xf32> to vector<8xf32>
    %19 = vector.shape_cast %18 : vector<8xf32> to vector<8x1xf32>
    %20 = arith.subf %13, %9 : vector<8x256xf32>
    %21 = arith.mulf %17, %20 : vector<8x256xf32>
    %cst_8 = arith.constant dense<0.000000e+00> : vector<8xf32>
    %22 = vector.multi_reduction <add>, %21, %cst_8 [1] : vector<8x256xf32> to vector<8xf32>
    %23 = vector.shape_cast %22 : vector<8xf32> to vector<8x1xf32>
    %24 = arith.divf %23, %19 : vector<8x1xf32>
    %25 = math.log %16 : vector<8x1xf32>
    %26 = math.log %19 : vector<8x1xf32>
    %27 = arith.subf %25, %26 : vector<8x1xf32>
    %28 = arith.addf %24, %27 : vector<8x1xf32>
    %c0_9 = arith.constant 0 : index
    %c0_10 = arith.constant 0 : index
    %29 = vector.load %arg3[%c0_9, %c0_10] : memref<8x1xf32, #tpu.memory_space<vmem>>, vector<8x1xf32>
    tpu.vector_store %arg3[%c0_9, %c0_10], %28 {strides = array<i32>} : memref<8x1xf32, #tpu.memory_space<vmem>>, vector<8x1xf32>,
    return
  }
  func.func @transform_0(%arg0: i32) -> (i32, i32) {
    %c0_i32 = arith.constant 0 : i32
    %c0_i32_0 = arith.constant 0 : i32
    return %arg0, %c0_i32 : i32, i32
  }
  func.func @transform_1(%arg0: i32) -> (i32, i32) {
    %c0_i32 = arith.constant 0 : i32
    %c0_i32_0 = arith.constant 0 : i32
    return %arg0, %c0_i32 : i32, i32
  }
  func.func @transform_2(%arg0: i32) -> (i32, i32) {
    %c0_i32 = arith.constant 0 : i32
    %c0_i32_0 = arith.constant 0 : i32
    return %arg0, %c0_i32 : i32, i32
  }
}

</mosaic_0001>

<bundles_post_ra>
// kernel: tpu_custom_call.1
= control target key start
LH: loop header
LB: loop body
LE: loop exit
PB: predicated region body
PF: predicated region fallthrough
CT: control target
= control target key end

     0   :  { %7 = vsyncpa [#allocation3], 0  ;;  %s176_s0 = inlined_call_operand.hbm [shape: f32[8,256], index: 0, kind: input, shape index: {}]   ;;  %s177_s1 = inlined_call_operand.hbm [shape: f32[8,256], index: 1, kind: input, shape index: {}]   ;;  %s178_s2 = inlined_call_operand.vmem [shape: f32[8,1], index: 2, kind: output, shape index: {}]  }
   0x1   :  { %8 = vsyncpa [#allocation5], 0  ;;  %s150_s9 = smov [#allocation2]   ;;  %s151_s11 = smov [#allocation4]  }
   0x2   :  { %s15_s10 = sshll.u32 %s150_s9, 4  ;;  %s25_s12 = sshll.u32 %s151_s11, 4  ;;  %s16_s10 = int_to_ptr.vmem [resolvable:$true] %s15_s10  ;;  %s26_s12 = int_to_ptr.vmem [resolvable:$true] %s25_s12 }
   0x3   :  { %s114_s13 = scalar_lea.vmem %s16_s10, 256  ;;  %p119_p1 = scmp.lt.s32.totalorder %s16_s10, %s16_s10 }
   0x4   :  { %p115_p0 = scmp.ne.s32.totalorder %s16_s10, %s114_s13  ;;  %p120_p2 = scmp.lt.s32.totalorder %s114_s13, %s114_s13 }
   0x6   :  { %p121_p3 = por %p120_p2, %p119_p1 }
   0x8   :  { %p122_p4 = pnand %p121_p3, %p115_p0 }
   0xa   :  { %125 = shalt.err (!%p122_p4)
}
   0xb   :  { %18 = dma.hbm_to_vmem [thread:$0]  %s176_s0, 256, %s16_s10, [#allocation3]  }
   0xc   :  { %s134_s16 = scalar_lea.vmem %s26_s12, 256  ;;  %p139_p6 = scmp.lt.s32.totalorder %s26_s12, %s26_s12 }
   0xd   :  { %p135_p5 = scmp.ne.s32.totalorder %s26_s12, %s134_s16  ;;  %p140_p7 = scmp.lt.s32.totalorder %s134_s16, %s134_s16 }
   0xf   :  { %p141_p8 = por %p140_p7, %p139_p6 }
  0x11   :  { %p142_p9 = pnand %p141_p8, %p135_p5 }
  0x13   :  { %145 = shalt.err (!%p142_p9)
}
  0x14   :  { %28 = dma.hbm_to_vmem [thread:$0]  %s177_s1, 256, %s26_s12, [#allocation5]  }
  0x15   :  { %146 = dma.done.wait [#allocation3], 256  }
  0x16   :  { %147 = vsyncadd [#allocation3], 4294967040 }
  0x17   :  { %148 = dma.done.wait [#allocation5], 256  }
  0x18   :  { %149 = vsyncadd [#allocation5], 4294967040  ;;  %v35_v0 = vld [vmem:[#allocation2] sm:$0xff]  ;;  %v36_v1 = vld [vmem:[#allocation2 + $0x8] sm:$0xff]  ;;  %vm82_vm0 = vcmask 7168  }
  0x19   :  { %v39_v2 = vld [vmem:[#allocation4] sm:$0xff]  ;;  %v37_v3 = vmul.f32 0.25, %v35_v0  ;;  %v38_v4 = vmul.f32 0.25, %v36_v1  ;;  %v40_v5 = vld [vmem:[#allocation4 + $0x8] sm:$0xff] }
  0x1a   :  { %v41_v6 = vmul.f32 0.25, %v39_v2  ;;  %v42_v7 = vmul.f32 0.25, %v40_v5 }
  0x1b   :  { %v43_v8 = vmax.f32 %v37_v3, %v38_v4 }
  0x1c   :  { %v48_v9 = vmax.f32 %v41_v6, %v42_v7 }
  0x1d   :  { %44 = vmax.xlane.f32.xlu0 %v43_v8 }
  0x21   :  { %49 = vmax.xlane.f32.xlu0 %v48_v9 }
  0xa6   :  { %v45_v10 = vpop.xlane.xlu0 %44 }
  0xa7   :  { %v46_v11 = vsub.f32 %v37_v3, %v45_v10  ;;  %v47_v12 = vsub.f32 %v38_v4, %v45_v10 }
  0xa9   :  { %v53_v13 = vmul.f32 1.442695, %v46_v11  ;;  %v55_v14 = vmul.f32 1.442695, %v47_v12 }
  0xaa   :  { %v50_v15 = vpop.xlane.xlu0 %49 }
  0xab   :  { %92 = vpow2.f32 %v53_v13  ;;  %v51_v16 = vsub.f32 %v41_v6, %v50_v15  ;;  %v52_v17 = vsub.f32 %v42_v7, %v50_v15 }
  0xac   :  { %94 = vpow2.f32 %v55_v14 }
  0xad   :  { %v60_v18 = vmul.f32 1.442695, %v51_v16  ;;  %v62_v19 = vmul.f32 1.442695, %v52_v17  ;;  %v67_v23 = vsub.f32 %v51_v16, %v46_v11  ;;  %v68_v25 = vsub.f32 %v52_v17, %v47_v12 }
  0xaf   :  { %96 = vpow2.f32 %v60_v18 }
  0xb0   :  { %98 = vpow2.f32 %v62_v19 }
  0xb8   :  { %v93_v20 = vpop.eup %92 }
  0xb9   :  { %v95_v21 = vpop.eup %94 }
  0xba   :  { %v57_v22 = vadd.f32 %v95_v21, %v93_v20 }
  0xbc   :  { %v97_v24 = vpop.eup %96  ;;  %58 = vadd.xlane.f32.xlu1 %v57_v22 }
  0xbd   :  { %v99_v26 = vpop.eup %98  ;;  %v69_v27 = vmul.f32 %v97_v24, %v67_v23 }
  0xbe   :  { %v64_v28 = vadd.f32 %v99_v26, %v97_v24  ;;  %v70_v29 = vmul.f32 %v99_v26, %v68_v25 }
  0xc0   :  { %65 = vadd.xlane.f32.xlu1 %v64_v28  ;;  %v71_v30 = vadd.f32 %v70_v29, %v69_v27 }
  0xc2   :  { %72 = vadd.xlane.f32.xlu0 %v71_v30 }
 0x145   :  { %v59_v31 = vpop.xlane.xlu1 %58 }
 0x146   :  { %100 = vlog2.f32 %v59_v31 }
 0x149   :  { %v66_v32 = vpop.xlane.xlu1 %65 }
 0x14a   :  { %102 = vrcp.f32 %v66_v32 }
 0x14b   :  { %104 = vlog2.f32 %v66_v32  ;;  %v73_v38 = vpop.xlane.xlu0 %72 }
 0x153   :  { %v101_v33 = vpop.eup %100 }
 0x154   :  { %v77_v36 = vmul.f32 0.6931472, %v101_v33 }
 0x157   :  { %v103_v34 = vpop.eup %102 }
 0x158   :  { %v105_v35 = vpop.eup %104  ;;  %v75_v39 = vmul.f32 %v103_v34, %v73_v38 }
 0x159   :  { %v79_v37 = vmul.f32 0.6931472, %v105_v35 }
 0x15b   :  { %v80_v40 = vsub.f32 %v77_v36, %v79_v37 }
 0x15d   :  { %v81_v41 = vadd.f32 %v80_v40, %v75_v39 }
 0x15f   :  { %83 = vst.msk [vmem:[%s178_s2] sm:$0xff] %vm82_vm0, %v81_v41 }
 0x160   :  { %88 = vsyncpa [#allocation3], 1 }
 0x161   :  { %89 = vsyncpa [#allocation5], 1 }

</bundles_post_ra>
